<compile_context>
chip_gen: v7x
topology: tpu7x:2x2x1
jax: 0.10.0
libtpu: 0.0.40
codegen_flags: <defaults>
</compile_context>

<pallas_src>
import math
from functools import partial

import jax
import jax.numpy as jnp
from jax.experimental import pallas as pl
from jax.experimental.pallas import tpu as pltpu

_PI = math.pi

_PARALLEL_B = pltpu.CompilerParams(dimension_semantics=("parallel",))


# ---------------------------------------------------------------------------
# Helpers
# ---------------------------------------------------------------------------
def _choose_tile_b(batch, row_bytes, target_bytes=2 << 20):
    """Largest batch tile whose input slab stays ~2 MiB (double-buffered by the
    pipeline -> ~4 MiB resident), a multiple of 8 sublanes, capped at 512 rows.
    Keeps VMEM use small on every generation (incl. v7x's 64 MiB VMEM)."""
    if batch <= 8:
        return batch
    t = max(8, target_bytes // max(row_bytes, 1))
    t = min(t, batch, 512)
    return max(8, (t // 8) * 8)


def _fast_recip(x):
    # EUP approximate reciprocal (frees the VALU divide slot) + one Newton step
    # (~2^-23 relative error) — plenty for softmax normalisation and the
    # 1e-6-clipped Cauchy CDF.
    r = pl.reciprocal(x, approx=True)
    return r * (2.0 - x * r)


def _softplus(x):
    # Matches torch.nn.functional.softplus(beta=1, threshold=20).
    safe = jnp.minimum(x, 20.0)
    return jnp.where(x > 20.0, x, jnp.log1p(jnp.exp(safe)))


def _atan(x):
    # Cephes-style float32 arctangent (|err| ~ 1e-7 rad); divisions go through
    # the EUP via _fast_recip.
    sign = jnp.sign(x)
    ax = jnp.abs(x)
    tan3pi8 = 2.414213562373095
    tanpi8 = 0.4142135623730950
    big = ax > tan3pi8
    mid = jnp.logical_and(ax > tanpi8, jnp.logical_not(big))
    xr = jnp.where(
        big,
        -_fast_recip(jnp.maximum(ax, 1e-30)),
        jnp.where(mid, (ax - 1.0) * _fast_recip(ax + 1.0), ax),
    )
    y0 = jnp.where(big, _PI / 2.0, jnp.where(mid, _PI / 4.0, 0.0))
    z = xr * xr
    poly = (
        ((8.05374449538e-2 * z - 1.38776856032e-1) * z + 1.99777106478e-1) * z
        - 3.33329491539e-1
    ) * z * xr + xr
    return sign * (y0 + poly)


# ---------------------------------------------------------------------------
# Kernels
# ---------------------------------------------------------------------------
def _multiclass_kernel(logits_ref, probs_ref, out_ref):
    # logits_ref: [TB, P, C], probs_ref: [TB, P], out_ref: [TB, C].
    logits = logits_ref[...].astype(jnp.float32)
    probs = probs_ref[...].astype(jnp.float32)
    # weighted[b, c] = sum_p logits[b, p, c] * probs[b, p]   (VPU + sublane reduce)
    weighted = jnp.sum(logits * probs[:, :, None], axis=1)          # [TB, C]
    m = jnp.max(weighted, axis=-1, keepdims=True)
    e = jnp.exp(weighted - m)
    denom = jnp.sum(e, axis=-1, keepdims=True)
    out_ref[...] = (e * _fast_recip(denom)).astype(out_ref.dtype)


def _binary_kernel(thr_ref, mu_ref, gamma_ref, probs_ref, out_ref):
    # thr_ref: SMEM [1]; mu/gamma/probs: [TB, P]; out_ref: [TB, 2].
    thr = thr_ref[0]
    mu = mu_ref[...].astype(jnp.float32)
    gamma = gamma_ref[...].astype(jnp.float32)
    probs = probs_ref[...].astype(jnp.float32)

    # softplus floored so gamma << 0 cannot give 0 -> inf/NaN downstream.
    gamma_pos = jnp.maximum(_softplus(gamma), 1e-20)
    p1 = 0.5 - (1.0 / _PI) * _atan((thr - mu) * _fast_recip(gamma_pos))
    p1 = jnp.clip(p1, 1e-6, 1.0 - 1e-6)
    f1 = jnp.sum(p1 * probs, axis=1, keepdims=True)                  # [TB, 1]
    col = jax.lax.broadcasted_iota(jnp.int32, (f1.shape[0], 2), 1)
    out_ref[...] = jnp.where(col == 0, 1.0 - f1, f1).astype(out_ref.dtype)


# ---------------------------------------------------------------------------
# Wrappers
# ---------------------------------------------------------------------------
@partial(jax.jit, static_argnames=("tile_b",))
def classification_head_multiclass(path_class_logits, path_probs, *, tile_b=None):
    B, P, C = path_class_logits.shape
    itemsize = jnp.dtype(path_class_logits.dtype).itemsize
    if tile_b is None:
        tile_b = _choose_tile_b(B, P * C * itemsize)
    return pl.pallas_call(
        _multiclass_kernel,
        out_shape=jax.ShapeDtypeStruct((B, C), jnp.float32),
        grid=(pl.cdiv(B, tile_b),),
        in_specs=[
            pl.BlockSpec((tile_b, P, C), lambda i: (i, 0, 0)),
            pl.BlockSpec((tile_b, P), lambda i: (i, 0)),
        ],
        out_specs=pl.BlockSpec((tile_b, C), lambda i: (i, 0)),
        compiler_params=_PARALLEL_B,
    )(path_class_logits, path_probs)


@partial(jax.jit, static_argnames=("tile_b",))
def classification_head_binary(mu_scores, gamma_scores, path_probs, thresholds,
                               *, tile_b=None):
    B, P = mu_scores.shape
    itemsize = jnp.dtype(mu_scores.dtype).itemsize
    if tile_b is None:
        tile_b = _choose_tile_b(B, 3 * P * itemsize)
    # The PyTorch spec only ever reads thresholds[0]; keep a single SMEM scalar.
    thr = jnp.reshape(thresholds, (-1,))[:1].astype(jnp.float32)     # [1]
    return pl.pallas_call(
        _binary_kernel,
        out_shape=jax.ShapeDtypeStruct((B, 2), jnp.float32),
        grid=(pl.cdiv(B, tile_b),),
        in_specs=[
            pl.BlockSpec(memory_space=pltpu.MemorySpace.SMEM),       # thresholds
            pl.BlockSpec((tile_b, P), lambda i: (i, 0)),             # mu
            pl.BlockSpec((tile_b, P), lambda i: (i, 0)),             # gamma
            pl.BlockSpec((tile_b, P), lambda i: (i, 0)),             # path_probs
        ],
        out_specs=pl.BlockSpec((tile_b, 2), lambda i: (i, 0)),
        compiler_params=_PARALLEL_B,
    )(thr, mu_scores, gamma_scores, path_probs)


class ClassificationHead:
    """JAX/Pallas port of the PyTorch ClassificationHead (no parameters)."""

    def __init__(self, n_classes):
        self.n_classes = n_classes

    def __call__(self, path_class_logits=None, path_probs=None,
                 mu_scores=None, gamma_scores=None, thresholds=None):
        if self.n_classes > 2:
            if path_class_logits is None or path_probs is None:
                raise ValueError(
                    "For n_classes > 2, path_class_logits and path_probs must be provided.")
            return classification_head_multiclass(path_class_logits, path_probs)
        elif self.n_classes == 2:
            if (mu_scores is None or gamma_scores is None
                    or path_probs is None or thresholds is None):
                raise ValueError(
                    "For n_classes == 2, mu_scores, gamma_scores, path_probs, and "
                    "thresholds must be provided.")
            return classification_head_binary(mu_scores, gamma_scores,
                                              path_probs, thresholds)
        raise ValueError(f"Unsupported n_classes: {self.n_classes}")


# ---------------------------------------------------------------------------
# Demo / correctness check
# ---------------------------------------------------------------------------
if __name__ == "__main__":
    key = jax.random.PRNGKey(0)
    k1, k2, k3, k4, k5, k6, k7 = jax.random.split(key, 7)

    # ---- multiclass, small n_classes ----
    B, P, C = 24, 8, 4
    logits_s = jax.random.normal(k1, (B, P, C), jnp.float32)
    probs_s = jax.nn.softmax(jax.random.normal(k2, (B, P), jnp.float32), axis=-1)
    out_s = ClassificationHead(n_classes=C)(path_class_logits=logits_s, path_probs=probs_s)
    # Exercise a multi-step grid with a partial final batch block.
    out_s_tiled = classification_head_multiclass(logits_s, probs_s, tile_b=16)

    # ---- multiclass, wide n_classes ----
    Bw, Pw, Cw = 8, 128, 128
    logits_w = jax.random.normal(k3, (Bw, Pw, Cw), jnp.float32)
    probs_w = jax.nn.softmax(jax.random.normal(k4, (Bw, Pw), jnp.float32), axis=-1)
    out_w = ClassificationHead(n_classes=Cw)(path_class_logits=logits_w, path_probs=probs_w)

    # ---- binary (n_classes == 2) ----
    Bb, Pb = 16, 8
    mu_scores = jax.random.normal(k5, (Bb, Pb), jnp.float32)
    gamma_scores = jax.random.normal(k6, (Bb, Pb), jnp.float32)
    probs_b = jax.nn.softmax(jax.random.normal(k7, (Bb, Pb), jnp.float32), axis=-1)
    thresholds = jnp.array([0.25], jnp.float32)
    out_b = ClassificationHead(n_classes=2)(mu_scores=mu_scores, gamma_scores=gamma_scores,
                                            path_probs=probs_b, thresholds=thresholds)
    # Exercise a multi-step grid on the binary path too.
    out_b_tiled = classification_head_binary(mu_scores, gamma_scores, probs_b,
                                             thresholds, tile_b=8)

    (out_s, out_s_tiled, out_w, out_b, out_b_tiled) = jax.block_until_ready(
        (out_s, out_s_tiled, out_w, out_b, out_b_tiled))

    # Pure-JAX references.
    ref_s = jax.nn.softmax(jnp.sum(logits_s * probs_s[:, :, None], axis=1), axis=1)
    ref_w = jax.nn.softmax(jnp.sum(logits_w * probs_w[:, :, None], axis=1), axis=1)
    gpos = jax.nn.softplus(gamma_scores)
    p1 = jnp.clip(
        0.5 - (1.0 / _PI) * jnp.arctan((thresholds[0] - mu_scores) / gpos),
        1e-6, 1.0 - 1e-6,
    )
    f1 = jnp.sum(p1 * probs_b, axis=1, keepdims=True)
    ref_b = jnp.concatenate([1.0 - f1, f1], axis=1)

    assert out_s.shape == (B, C) and out_w.shape == (Bw, Cw) and out_b.shape == (Bb, 2)
    assert jnp.allclose(out_s, ref_s, atol=1e-5), "multiclass (small C) mismatch"
    assert jnp.allclose(out_s_tiled, ref_s, atol=1e-5), "multiclass (tiled grid) mismatch"
    assert jnp.allclose(out_w, ref_w, atol=1e-5), "multiclass (wide C) mismatch"
    assert jnp.allclose(out_b, ref_b, atol=1e-5), "binary mismatch"
    assert jnp.allclose(out_b_tiled, ref_b, atol=1e-5), "binary (tiled grid) mismatch"

    print("KERNEL_OK")
</pallas_src>

<mosaic_0001>
module attributes {stable_mosaic.version = 11 : i64} {
  func.func @_multiclass_kernel(%arg0: i32, %arg1: memref<24x8x4xf32, #tpu.memory_space<vmem>>, %arg2: memref<24x8xf32, #tpu.memory_space<vmem>>, %arg3: memref<24x4xf32, #tpu.memory_space<vmem>>) attributes {dimension_semantics = [#tpu.dimension_semantics<parallel>], iteration_bounds = array<i64: 1>, scalar_prefetch = 0 : i64, scratch_operands = 0 : i64, tpu.core_type = #tpu.core_type<tc>, window_params = [{transform_indices = @transform_0, window_bounds = array<i64: 24, 8, 4>}, {transform_indices = @transform_1, window_bounds = array<i64: 24, 8>}, {transform_indices = @transform_2, window_bounds = array<i64: 24, 4>}]} {
    %c0 = arith.constant 0 : index
    %c0_0 = arith.constant 0 : index
    %c0_1 = arith.constant 0 : index
    %0 = vector.load %arg1[%c0, %c0_0, %c0_1] : memref<24x8x4xf32, #tpu.memory_space<vmem>>, vector<24x8x4xf32>
    %c0_2 = arith.constant 0 : index
    %c0_3 = arith.constant 0 : index
    %1 = vector.load %arg2[%c0_2, %c0_3] : memref<24x8xf32, #tpu.memory_space<vmem>>, vector<24x8xf32>
    %2 = vector.shape_cast %1 : vector<24x8xf32> to vector<24x8x1xf32>
    %3 = vector.broadcast %2 : vector<24x8x1xf32> to vector<24x8x4xf32>
    %4 = arith.mulf %0, %3 : vector<24x8x4xf32>
    %cst = arith.constant dense<0.000000e+00> : vector<24x4xf32>
    %5 = vector.multi_reduction <add>, %4, %cst [1] : vector<24x8x4xf32> to vector<24x4xf32>
    %cst_4 = arith.constant dense<0xFF800000> : vector<24xf32>
    %6 = vector.multi_reduction <maximumf>, %5, %cst_4 [1] : vector<24x4xf32> to vector<24xf32>
    %7 = vector.shape_cast %6 : vector<24xf32> to vector<24x1xf32>
    %8 = vector.broadcast %7 : vector<24x1xf32> to vector<24x4xf32>
    %9 = arith.subf %5, %8 : vector<24x4xf32>
    %10 = math.exp %9 : vector<24x4xf32>
    %cst_5 = arith.constant dense<0.000000e+00> : vector<24xf32>
    %11 = vector.multi_reduction <add>, %10, %cst_5 [1] : vector<24x4xf32> to vector<24xf32>
    %12 = vector.shape_cast %11 : vector<24xf32> to vector<24x1xf32>
    %13 = tpu.reciprocal %12 {approx = true} : vector<24x1xf32> -> vector<24x1xf32>
    %14 = arith.mulf %12, %13 : vector<24x1xf32>
    %cst_6 = arith.constant 2.000000e+00 : f32
    %15 = vector.broadcast %cst_6 : f32 to vector<24x1xf32>
    %16 = arith.subf %15, %14 : vector<24x1xf32>
    %17 = arith.mulf %13, %16 : vector<24x1xf32>
    %18 = vector.broadcast %17 : vector<24x1xf32> to vector<24x4xf32>
    %19 = arith.mulf %10, %18 : vector<24x4xf32>
    %c0_7 = arith.constant 0 : index
    %c0_8 = arith.constant 0 : index
    %20 = vector.load %arg3[%c0_7, %c0_8] : memref<24x4xf32, #tpu.memory_space<vmem>>, vector<24x4xf32>
    tpu.vector_store %arg3[%c0_7, %c0_8], %19 {strides = array<i32>} : memref<24x4xf32, #tpu.memory_space<vmem>>, vector<24x4xf32>,
    return
  }
  func.func @transform_0(%arg0: i32) -> (i32, i32, i32) {
    %c0_i32 = arith.constant 0 : i32
    %c0_i32_0 = arith.constant 0 : i32
    %c0_i32_1 = arith.constant 0 : i32
    return %arg0, %c0_i32, %c0_i32_0 : i32, i32, i32
  }
  func.func @transform_1(%arg0: i32) -> (i32, i32) {
    %c0_i32 = arith.constant 0 : i32
    %c0_i32_0 = arith.constant 0 : i32
    return %arg0, %c0_i32 : i32, i32
  }
  func.func @transform_2(%arg0: i32) -> (i32, i32) {
    %c0_i32 = arith.constant 0 : i32
    %c0_i32_0 = arith.constant 0 : i32
    return %arg0, %c0_i32 : i32, i32
  }
}

</mosaic_0001>

<bundles_post_ra>
// kernel: classification_head_multiclass.1
= control target key start
LH: loop header
LB: loop body
LE: loop exit
PB: predicated region body
PF: predicated region fallthrough
CT: control target
= control target key end

     0   :  { %v38_v0 = vlaneseq  ;;  %vm230_vm0 = vcmask 31744   ;;  %vm423_vm1 = vcmask 1041409   ;;  %vm425_vm2 = vcmask 1042434   ;;  %s1297_s1 = inlined_call_operand.vmem [shape: f32[24,8], index: 1, kind: input, shape index: {}]   ;;  %s1298_s0 = inlined_call_operand.vmem [shape: f32[24,8,4], index: 0, kind: input, shape index: {}]   ;;  %s1299_s2 = inlined_call_operand.vmem [shape: f32[24,4], index: 2, kind: output, shape index: {}]  }
   0x1   :  { %v36_v2 = vld [vmem:[%s1297_s1 + $0x8] sm:$0xff]  ;;  %v35_v3 = vld [vmem:[%s1297_s1] sm:$0xff]  ;;  %v37_v10 = vld [vmem:[%s1297_s1 + $0x10] sm:$0xff]  ;;  %vm427_vm3 = vcmask 1043459   ;;  %vm429_vm4 = vcmask 1044484   ;;  %vm431_vm5 = vcmask 1045509  }
   0x2   :  { %v39_v1 = vshrl.u32 %v38_v0, 7  ;;  %v19_v37 = vld [vmem:[%s1298_s0 + $0x40] sm:$0xff]  ;;  %v20_v43 = vld [vmem:[%s1298_s0 + $0x48] sm:$0xff]  ;;  %vm433_vm6 = vcmask 1046534   ;;  %vm435_vm7 = vcmask 1047559  }
   0x3   :  { %v11_v38 = vld [vmem:[%s1298_s0] sm:$0xff]  ;;  %v12_v44 = vld [vmem:[%s1298_s0 + $0x8] sm:$0xff] }
   0x4   :  { %v40_v4 = vsub.s32 0, %v39_v1  ;;  %v47_v5 = vsub.s32 1, %v39_v1  ;;  %v54_v13 = vsub.s32 2, %v39_v1  ;;  %v61_v16 = vsub.s32 3, %v39_v1  ;;  %v28_v54 = vld [vmem:[%s1298_s0 + $0x88] sm:$0xff]  ;;  %v27_v55 = vld [vmem:[%s1298_s0 + $0x80] sm:$0xff] }
   0x5   :  { %v68_v21 = vsub.s32 4, %v39_v1  ;;  %v75_v24 = vsub.s32 5, %v39_v1  ;;  %v82_v29 = vsub.s32 6, %v39_v1  ;;  %v89_v32 = vsub.s32 7, %v39_v1 }
   0x6   :  { %v97_v6 = vrot.slane %v36_v2, %v40_v4  ;;  %v41_v7 = vrot.slane %v35_v3, %v40_v4  ;;  %v104_v8 = vrot.slane %v36_v2, %v47_v5  ;;  %v48_v9 = vrot.slane %v35_v3, %v47_v5 }
   0x7   :  { %v160_v11 = vrot.slane %v37_v10, %v47_v5  ;;  %v153_v12 = vrot.slane %v37_v10, %v40_v4  ;;  %v111_v14 = vrot.slane %v36_v2, %v54_v13  ;;  %v55_v15 = vrot.slane %v35_v3, %v54_v13  ;;  %v21_v4 = vld [vmem:[%s1298_s0 + $0x50] sm:$0xff] }
   0x8   :  { %99 = vbcast.lane.b32.xlu1 %v97_v6, 256  ;;  %43 = vbcast.lane.b32.xlu0 %v41_v7, 256  ;;  %v62_v17 = vrot.slane %v35_v3, %v61_v16  ;;  %v167_v18 = vrot.slane %v37_v10, %v54_v13  ;;  %v174_v19 = vrot.slane %v37_v10, %v61_v16  ;;  %v13_v5 = vld [vmem:[%s1298_s0 + $0x10] sm:$0xff] }
   0x9   :  { %v118_v20 = vrot.slane %v36_v2, %v61_v16  ;;  %v125_v22 = vrot.slane %v36_v2, %v68_v21  ;;  %v69_v23 = vrot.slane %v35_v3, %v68_v21  ;;  %v76_v25 = vrot.slane %v35_v3, %v75_v24 }
   0xa   :  { %v181_v26 = vrot.slane %v37_v10, %v68_v21  ;;  %v188_v27 = vrot.slane %v37_v10, %v75_v24  ;;  %v132_v28 = vrot.slane %v36_v2, %v75_v24  ;;  %v139_v30 = vrot.slane %v36_v2, %v82_v29 }
   0xb   :  { %v83_v31 = vrot.slane %v35_v3, %v82_v29  ;;  %v90_v33 = vrot.slane %v35_v3, %v89_v32  ;;  %v195_v34 = vrot.slane %v37_v10, %v82_v29  ;;  %v202_v35 = vrot.slane %v37_v10, %v89_v32 }
   0xc   :  { %106 = vbcast.lane.b32.xlu1 %v104_v8, 256  ;;  %50 = vbcast.lane.b32.xlu0 %v48_v9, 256  ;;  %v146_v36 = vrot.slane %v36_v2, %v89_v32 }
  0x10   :  { %162 = vbcast.lane.b32.xlu1 %v160_v11, 256  ;;  %155 = vbcast.lane.b32.xlu0 %v153_v12, 256 }
  0x14   :  { %113 = vbcast.lane.b32.xlu1 %v111_v14, 256  ;;  %57 = vbcast.lane.b32.xlu0 %v55_v15, 256 }
  0x18   :  { %64 = vbcast.lane.b32.xlu1 %v62_v17, 256  ;;  %169 = vbcast.lane.b32.xlu0 %v167_v18, 256  ;;  %v14_v18 = vld [vmem:[%s1298_s0 + $0x18] sm:$0xff] }
  0x1c   :  { %176 = vbcast.lane.b32.xlu1 %v174_v19, 256  ;;  %120 = vbcast.lane.b32.xlu0 %v118_v20, 256  ;;  %v29_v19 = vld [vmem:[%s1298_s0 + $0x90] sm:$0xff] }
  0x20   :  { %127 = vbcast.lane.b32.xlu1 %v125_v22, 256  ;;  %71 = vbcast.lane.b32.xlu0 %v69_v23, 256 }
  0x24   :  { %78 = vbcast.lane.b32.xlu1 %v76_v25, 256  ;;  %183 = vbcast.lane.b32.xlu0 %v181_v26, 256 }
  0x28   :  { %190 = vbcast.lane.b32.xlu1 %v188_v27, 256  ;;  %134 = vbcast.lane.b32.xlu0 %v132_v28, 256 }
  0x2c   :  { %141 = vbcast.lane.b32.xlu1 %v139_v30, 256  ;;  %85 = vbcast.lane.b32.xlu0 %v83_v31, 256 }
  0x30   :  { %92 = vbcast.lane.b32.xlu1 %v90_v33, 256  ;;  %197 = vbcast.lane.b32.xlu0 %v195_v34, 256 }
  0x34   :  { %204 = vbcast.lane.b32.xlu1 %v202_v35, 256  ;;  %148 = vbcast.lane.b32.xlu0 %v146_v36, 256 }
  0x7a   :  { %v100_v39 = vpop.permute.xlu1 %99  ;;  %v44_v40 = vpop.permute.xlu0 %43 }
  0x7b   :  { %v214_v41 = vmul.f32 %v100_v39, %v19_v37  ;;  %v206_v42 = vmul.f32 %v44_v40, %v11_v38  ;;  %v30_v40 = vld [vmem:[%s1298_s0 + $0x98] sm:$0xff] }
  0x7d   :  { %v287_v45 = vsel %vm230_vm0, %v214_v41, 0.0  ;;  %v231_v46 = vsel %vm230_vm0, %v206_v42, 0.0  ;;  %v22_v41 = vld [vmem:[%s1298_s0 + $0x58] sm:$0xff] }
  0x7e   :  { %v288_v47 = vrot.slane %v287_v45, 4  ;;  %v107_v48 = vpop.permute.xlu1 %106  ;;  %v51_v49 = vpop.permute.xlu0 %50  ;;  %v232_v53 = vrot.slane %v231_v46, 4 }
  0x7f   :  { %v215_v50 = vmul.f32 %v107_v48, %v20_v43  ;;  %v207_v51 = vmul.f32 %v51_v49, %v12_v44 }
  0x80   :  { %v289_v52 = vadd.f32 %v288_v47, %v287_v45  ;;  %v233_v1 = vadd.f32 %v232_v53, %v231_v46 }
  0x81   :  { %v294_v56 = vsel %vm230_vm0, %v215_v50, 0.0  ;;  %v238_v57 = vsel %vm230_vm0, %v207_v51, 0.0 }
  0x82   :  { %v295_v58 = vrot.slane %v294_v56, 4  ;;  %v239_v59 = vrot.slane %v238_v57, 4  ;;  %v163_v60 = vpop.permute.xlu1 %162  ;;  %v156_v61 = vpop.permute.xlu0 %155  ;;  %v290_v0 = vrot.slane %v289_v52, 2  ;;  %v234_v16 = vrot.slane %v233_v1, 2 }
  0x83   :  { %v223_v62 = vmul.f32 %v163_v60, %v28_v54  ;;  %v222_v63 = vmul.f32 %v156_v61, %v27_v55 }
  0x84   :  { %v296_v2 = vadd.f32 %v295_v58, %v294_v56  ;;  %v240_v3 = vadd.f32 %v239_v59, %v238_v57  ;;  %v291_v15 = vadd.f32 %v290_v0, %v289_v52  ;;  %v235_v33 = vadd.f32 %v234_v16, %v233_v1  ;;  %v23_v59 = vld [vmem:[%s1298_s0 + $0x60] sm:$0xff] }
  0x85   :  { %v350_v6 = vsel %vm230_vm0, %v223_v62, 0.0  ;;  %v343_v7 = vsel %vm230_vm0, %v222_v63, 0.0  ;;  %v31_v16 = vld [vmem:[%s1298_s0 + $0xa0] sm:$0xff] }
  0x86   :  { %v297_v8 = vrot.slane %v296_v2, 2  ;;  %v114_v9 = vpop.permute.xlu1 %113  ;;  %v58_v10 = vpop.permute.xlu0 %57  ;;  %v351_v11 = vrot.slane %v350_v6, 4  ;;  %v344_v12 = vrot.slane %v343_v7, 4  ;;  %v241_v17 = vrot.slane %v240_v3, 2 }
  0x87   :  { %v216_v13 = vmul.f32 %v114_v9, %v21_v4  ;;  %v208_v14 = vmul.f32 %v58_v10, %v13_v5  ;;  %v292_v37 = vrot.slane %v291_v15, 1  ;;  %v236_v51 = vrot.slane %v235_v33, 1 }
  0x88   :  { %v352_v20 = vadd.f32 %v351_v11, %v350_v6  ;;  %v345_v21 = vadd.f32 %v344_v12, %v343_v7  ;;  %v298_v24 = vadd.f32 %v297_v8, %v296_v2  ;;  %v242_v34 = vadd.f32 %v241_v17, %v240_v3  ;;  %v15_v2 = vld [vmem:[%s1298_s0 + $0x20] sm:$0xff] }
  0x89   :  { %v301_v22 = vsel %vm230_vm0, %v216_v13, 0.0  ;;  %v245_v23 = vsel %vm230_vm0, %v208_v14, 0.0  ;;  %v945_v55 = vadd.f32 %v292_v37, %v291_v15  ;;  %v957_v7 = vadd.f32 %v236_v51, %v235_v33  ;;  %v16_v15 = vld [vmem:[%s1298_s0 + $0x28] sm:$0xff] }
  0x8a   :  { %v302_v25 = vrot.slane %v301_v22, 4  ;;  %v246_v26 = vrot.slane %v245_v23, 4  ;;  %v65_v27 = vpop.permute.xlu1 %64  ;;  %v170_v28 = vpop.permute.xlu0 %169  ;;  %v353_v29 = vrot.slane %v352_v20, 2  ;;  %v346_v30 = vrot.slane %v345_v21, 2 }
  0x8b   :  { %v209_v31 = vmul.f32 %v65_v27, %v14_v18  ;;  %v224_v32 = vmul.f32 %v170_v28, %v29_v19  ;;  %v299_v42 = vrot.slane %v298_v24, 1  ;;  %v243_v52 = vrot.slane %v242_v34, 1 }
  0x8c   :  { %v303_v35 = vadd.f32 %v302_v25, %v301_v22  ;;  %v247_v36 = vadd.f32 %v246_v26, %v245_v23  ;;  %v354_v43 = vadd.f32 %v353_v29, %v352_v20  ;;  %v347_v47 = vadd.f32 %v346_v30, %v345_v21 }
  0x8d   :  { %v252_v38 = vsel %vm230_vm0, %v209_v31, 0.0  ;;  %v357_v39 = vsel %vm230_vm0, %v224_v32, 0.0  ;;  %v950_v60 = vadd.f32 %v299_v42, %v298_v24  ;;  %v959_v8 = vadd.f32 %v243_v52, %v242_v34  ;;  %v24_v42 = vld [vmem:[%s1298_s0 + $0x68] sm:$0xff] }
  0x8e   :  { %v248_v44 = vrot.slane %v247_v36, 2  ;;  %v177_v45 = vpop.permute.xlu1 %176  ;;  %v121_v46 = vpop.permute.xlu0 %120  ;;  %v304_v48 = vrot.slane %v303_v35, 2  ;;  %v253_v49 = vrot.slane %v252_v38, 4  ;;  %v358_v50 = vrot.slane %v357_v39, 4 }
  0x8f   :  { %v225_v53 = vmul.f32 %v177_v45, %v30_v40  ;;  %v217_v54 = vmul.f32 %v121_v46, %v22_v41  ;;  %v355_v61 = vrot.slane %v354_v43, 1  ;;  %v348_v3 = vrot.slane %v347_v47, 1 }
  0x90   :  { %v249_v56 = vadd.f32 %v248_v44, %v247_v36  ;;  %v254_v57 = vadd.f32 %v253_v49, %v252_v38  ;;  %v359_v58 = vadd.f32 %v358_v50, %v357_v39  ;;  %v305_v4 = vadd.f32 %v304_v48, %v303_v35  ;;  %v32_v35 = vld [vmem:[%s1298_s0 + $0xa8] sm:$0xff] }
  0x91   :  { %v364_v62 = vsel %vm230_vm0, %v225_v53, 0.0  ;;  %v308_v63 = vsel %vm230_vm0, %v217_v54, 0.0  ;;  %v970_v17 = vsel %vm423_vm1, %v950_v60, %v945_v55  ;;  %v972_v18 = vadd.f32 %v355_v61, %v354_v43 }
  0x92   :  { %v128_v0 = vpop.permute.xlu1 %127  ;;  %v72_v1 = vpop.permute.xlu0 %71  ;;  %v360_v5 = vrot.slane %v359_v58, 2  ;;  %v365_v6 = vrot.slane %v364_v62, 4  ;;  %v309_v9 = vrot.slane %v308_v63, 4  ;;  %v250_v11 = vrot.slane %v249_v56, 1 }
  0x93   :  { %v218_v10 = vmul.f32 %v128_v0, %v23_v59  ;;  %v255_v12 = vrot.slane %v254_v57, 2  ;;  %v210_v14 = vmul.f32 %v72_v1, %v15_v2  ;;  %v975_v23 = vadd.f32 %v348_v3, %v347_v47  ;;  %v17_v0 = vld [vmem:[%s1298_s0 + $0x30] sm:$0xff] }
  0x94   :  { %v366_v13 = vadd.f32 %v365_v6, %v364_v62  ;;  %v310_v19 = vadd.f32 %v309_v9, %v308_v63  ;;  %v306_v24 = vrot.slane %v305_v4, 1  ;;  %v361_v25 = vadd.f32 %v360_v5, %v359_v58 }
  0x95   :  { %v315_v20 = vsel %vm230_vm0, %v218_v10, 0.0  ;;  %v259_v28 = vsel %vm230_vm0, %v210_v14, 0.0  ;;  %v424_v31 = vsel %vm423_vm1, %v959_v8, %v957_v7  ;;  %v981_v32 = vadd.f32 %v250_v11, %v249_v56  ;;  %v25_v56 = vld [vmem:[%s1298_s0 + $0x70] sm:$0xff] }
  0x96   :  { %v79_v21 = vpop.permute.xlu1 %78  ;;  %v184_v22 = vpop.permute.xlu0 %183  ;;  %v316_v26 = vrot.slane %v315_v20, 4  ;;  %v367_v27 = vrot.slane %v366_v13, 2  ;;  %v256_v33 = vadd.f32 %v255_v12, %v254_v57  ;;  %v311_v34 = vrot.slane %v310_v19, 2 }
  0x97   :  { %v211_v29 = vmul.f32 %v79_v21, %v16_v15  ;;  %v226_v30 = vmul.f32 %v184_v22, %v31_v16  ;;  %v260_v37 = vrot.slane %v259_v28, 4  ;;  %v444_v43 = vsel %vm423_vm1, %v972_v18, %v975_v23  ;;  %v18_v22 = vld [vmem:[%s1298_s0 + $0x38] sm:$0xff] }
  0x98   :  { %v317_v36 = vadd.f32 %v316_v26, %v315_v20  ;;  %v994_v44 = vadd.f32 %v306_v24, %v305_v4  ;;  %v362_v45 = vrot.slane %v361_v25, 1  ;;  %v368_v47 = vadd.f32 %v367_v27, %v366_v13 }
  0x99   :  { %v266_v38 = vsel %vm230_vm0, %v211_v29, 0.0  ;;  %v371_v39 = vsel %vm230_vm0, %v226_v30, 0.0  ;;  %v261_v48 = vadd.f32 %v260_v37, %v259_v28  ;;  %v998_v51 = vsel %vm425_vm2, %v981_v32, %v424_v31  ;;  %v33_v29 = vld [vmem:[%s1298_s0 + $0xb0] sm:$0xff] }
  0x9a   :  { %v191_v40 = vpop.permute.xlu1 %190  ;;  %v135_v41 = vpop.permute.xlu0 %134  ;;  %v267_v46 = vrot.slane %v266_v38, 4  ;;  %v372_v49 = vrot.slane %v371_v39, 4  ;;  %v312_v52 = vadd.f32 %v311_v34, %v310_v19  ;;  %v257_v57 = vrot.slane %v256_v33, 1 }
  0x9b   :  { %v227_v50 = vmul.f32 %v191_v40, %v32_v35  ;;  %v219_v54 = vmul.f32 %v135_v41, %v24_v42  ;;  %v318_v58 = vrot.slane %v317_v36, 2  ;;  %v1007_v1 = vadd.f32 %v362_v45, %v361_v25  ;;  %v34_v35 = vld [vmem:[%s1298_s0 + $0xb8] sm:$0xff] }
  0x9c   :  { %v268_v53 = vadd.f32 %v267_v46, %v266_v38  ;;  %v373_v59 = vadd.f32 %v372_v49, %v371_v39  ;;  %v262_v2 = vrot.slane %v261_v48, 2  ;;  %v369_v5 = vrot.slane %v368_v47, 1 }
  0x9d   :  { %v378_v61 = vsel %vm230_vm0, %v227_v50, 0.0  ;;  %v322_v4 = vsel %vm230_vm0, %v219_v54, 0.0  ;;  %v313_v11 = vrot.slane %v312_v52, 1  ;;  %v1010_v15 = vadd.f32 %v257_v57, %v256_v33  ;;  %v26_v57 = vld [vmem:[%s1298_s0 + $0x78] sm:$0xff] }
  0x9e   :  { %v142_v62 = vpop.permute.xlu1 %141  ;;  %v86_v63 = vpop.permute.xlu0 %85  ;;  %v379_v3 = vrot.slane %v378_v61, 4  ;;  %v269_v6 = vrot.slane %v268_v53, 2  ;;  %v323_v9 = vrot.slane %v322_v4, 4  ;;  %v374_v12 = vrot.slane %v373_v59, 2 }
  0x9f   :  { %v220_v10 = vmul.f32 %v142_v62, %v25_v56  ;;  %v212_v14 = vmul.f32 %v86_v63, %v17_v0  ;;  %v1012_v16 = vadd.f32 %v318_v58, %v317_v36  ;;  %v263_v25 = vadd.f32 %v262_v2, %v261_v48 }
  0xa0   :  { %v380_v13 = vadd.f32 %v379_v3, %v378_v61  ;;  %v324_v19 = vadd.f32 %v323_v9, %v322_v4  ;;  %v1024_v30 = vsel %vm425_vm2, %v1007_v1, %v444_v43  ;;  %v1026_v31 = vadd.f32 %v369_v5, %v368_v47 }
  0xa1   :  { %v329_v20 = vsel %vm230_vm0, %v220_v10, 0.0  ;;  %v273_v28 = vsel %vm230_vm0, %v212_v14, 0.0  ;;  %v270_v33 = vadd.f32 %v269_v6, %v268_v53  ;;  %v1031_v36 = vadd.f32 %v313_v11, %v312_v52 }
  0xa2   :  { %v93_v21 = vpop.permute.xlu1 %92  ;;  %v198_v24 = vpop.permute.xlu0 %197  ;;  %v381_v26 = vrot.slane %v380_v13, 2  ;;  %v330_v27 = vrot.slane %v329_v20, 4  ;;  %v274_v34 = vrot.slane %v273_v28, 4  ;;  %v375_v37 = vadd.f32 %v374_v12, %v373_v59 }
  0xa3   :  { %v213_v39 = vmul.f32 %v93_v21, %v18_v22  ;;  %v320_v40 = vrot.slane %v1012_v16, 1  ;;  %v325_v41 = vrot.slane %v324_v19, 2  ;;  %v228_v43 = vmul.f32 %v198_v24, %v33_v29 }
  0xa4   :  { %v331_v38 = vadd.f32 %v330_v27, %v329_v20  ;;  %v275_v42 = vadd.f32 %v274_v34, %v273_v28  ;;  %v264_v46 = vrot.slane %v263_v25, 1  ;;  %v382_v47 = vadd.f32 %v381_v26, %v380_v13 }
  0xa5   :  { %v280_v48 = vsel %vm230_vm0, %v213_v39, 0.0  ;;  %v271_v50 = vrot.slane %v270_v33, 1  ;;  %v385_v54 = vsel %vm230_vm0, %v228_v43, 0.0  ;;  %v376_v58 = vrot.slane %v375_v37, 1 }
  0xa6   :  { %v205_v45 = vpop.permute.xlu1 %204  ;;  %v276_v53 = vrot.slane %v275_v42, 2  ;;  %v281_v52 = vrot.slane %v280_v48, 4  ;;  %v149_v56 = vpop.permute.xlu0 %148  ;;  %v332_v59 = vrot.slane %v331_v38, 2  ;;  %v386_v61 = vrot.slane %v385_v54, 4 }
  0xa7   :  { %v229_v49 = vmul.f32 %v205_v45, %v34_v35  ;;  %v326_v63 = vadd.f32 %v325_v41, %v324_v19  ;;  %v1040_v4 = vadd.f32 %v264_v46, %v263_v25  ;;  %v383_v5 = vrot.slane %v382_v47, 1 }
  0xa8   :  { %v277_v0 = vadd.f32 %v276_v53, %v275_v42  ;;  %v282_v2 = vadd.f32 %v281_v52, %v280_v48  ;;  %v387_v6 = vadd.f32 %v386_v61, %v385_v54  ;;  %v221_v9 = vmul.f32 %v149_v56, %v26_v57 }
  0xa9   :  { %v392_v62 = vsel %vm230_vm0, %v229_v49, 0.0  ;;  %v1042_v10 = vadd.f32 %v271_v50, %v270_v33  ;;  %v1044_v14 = vadd.f32 %v376_v58, %v375_v37  ;;  %v333_v20 = vadd.f32 %v332_v59, %v331_v38 }
  0xaa   :  { %v393_v3 = vrot.slane %v392_v62, 4  ;;  %v278_v11 = vrot.slane %v277_v0, 1  ;;  %v283_v12 = vrot.slane %v282_v2, 2  ;;  %v388_v21 = vrot.slane %v387_v6, 2 }
  0xab   :  { %v336_v22 = vsel %vm230_vm0, %v221_v9, 0.0  ;;  %v327_v19 = vrot.slane %v326_v63, 1  ;;  %v1047_v25 = vadd.f32 %v383_v5, %v382_v47  ;;  %v428_v33 = vsel %vm427_vm3, %v1010_v15, %v998_v51 }
  0xac   :  { %v394_v13 = vadd.f32 %v393_v3, %v392_v62  ;;  %v284_v24 = vadd.f32 %v283_v12, %v282_v2  ;;  %v337_v27 = vrot.slane %v336_v22, 4  ;;  %v1049_v28 = vadd.f32 %v278_v11, %v277_v0 }
  0xad   :  { %v389_v29 = vadd.f32 %v388_v21, %v387_v6  ;;  %v430_v38 = vsel %vm429_vm4, %v1040_v4, %v428_v33  ;;  %v1057_v39 = vadd.f32 %v320_v40, %v1012_v16  ;;  %v334_v41 = vrot.slane %v333_v20, 1 }
  0xae   :  { %v395_v26 = vrot.slane %v394_v13, 2  ;;  %v285_v34 = vrot.slane %v284_v24, 1  ;;  %v338_v37 = vadd.f32 %v337_v27, %v336_v22  ;;  %v432_v43 = vsel %vm431_vm5, %v1042_v10, %v430_v38 }
  0xaf   :  { %v390_v42 = vrot.slane %v389_v29, 1  ;;  %v446_v51 = vsel %vm427_vm3, %v1026_v31, %v1024_v30  ;;  %v1066_v48 = vadd.f32 %v327_v19, %v326_v63  ;;  %v434_v16 = vsel %vm433_vm6, %v1049_v28, %v432_v43 }
  0xb0   :  { %v396_v35 = vadd.f32 %v395_v26, %v394_v13  ;;  %v339_v46 = vrot.slane %v338_v37, 2  ;;  %v1061_v47 = vadd.f32 %v285_v34, %v284_v24  ;;  %v447_v40 = vsel %vm429_vm4, %v1044_v14, %v446_v51 }
  0xb1   :  { %v1068_v49 = vadd.f32 %v390_v42, %v389_v29  ;;  %v448_v54 = vsel %vm431_vm5, %v1047_v25, %v447_v40  ;;  %v438_v30 = vsel %vm425_vm2, %v994_v44, %v970_v17  ;;  %v1083_v56 = vadd.f32 %v334_v41, %v333_v20 }
  0xb2   :  { %v397_v45 = vrot.slane %v396_v35, 1  ;;  %v340_v50 = vadd.f32 %v339_v46, %v338_v37  ;;  %v436_v53 = vsel %vm435_vm7, %v1061_v47, %v434_v16  ;;  %v439_v61 = vsel %vm427_vm3, %v1031_v36, %v438_v30 }
  0xb3   :  { %v454_v57 = vsel %vm230_vm0, %v436_v53, -inf  ;;  %v449_v58 = vsel %vm433_vm6, %v1068_v49, %v448_v54  ;;  %v440_v63 = vsel %vm429_vm4, %v1057_v39, %v439_v61 }
  0xb4   :  { %v1076_v52 = vadd.f32 %v397_v45, %v396_v35  ;;  %v341_v59 = vrot.slane %v340_v50, 1  ;;  %455 = vmax.xlane.f32.xlu0 %v454_v57  ;;  %v441_v2 = vsel %vm431_vm5, %v1066_v48, %v440_v63 }
  0xb5   :  { %v442_v3 = vsel %vm433_vm6, %v1083_v56, %v441_v2 }
  0xb6   :  { %v450_v62 = vsel %vm435_vm7, %v1076_v52, %v449_v58  ;;  %v1095_v0 = vadd.f32 %v341_v59, %v340_v50 }
  0xb7   :  { %v460_v17 = vsel %vm230_vm0, %v450_v62, -inf }
  0xb8   :  { %v443_v5 = vsel %vm435_vm7, %v1095_v0, %v442_v3  ;;  %461 = vmax.xlane.f32.xlu0 %v460_v17 }
  0xb9   :  { %v457_v6 = vsel %vm230_vm0, %v443_v5, -inf }
  0xba   :  { %458 = vmax.xlane.f32.xlu1 %v457_v6 }
 0x141   :  { %v1104_v9 = vpop.xlane.xlu0 %455 }
 0x142   :  { %v466_v11 = vrot.slane %v1104_v9, 1  ;;  %v467_v12 = vrot.slane %v1104_v9, 2  ;;  %v468_v13 = vrot.slane %v1104_v9, 3  ;;  %v469_v20 = vrot.slane %v1104_v9, 4 }
 0x143   :  { %v470_v21 = vrot.slane %v1104_v9, 5  ;;  %v511_v22 = vsub.f32 %v957_v7, %v1104_v9  ;;  %v471_v29 = vrot.slane %v1104_v9, 6  ;;  %v472_v37 = vrot.slane %v1104_v9, 7 }
 0x144   :  { %v512_v19 = vsub.f32 %v959_v8, %v466_v11  ;;  %v513_v24 = vsub.f32 %v981_v32, %v467_v12  ;;  %v514_v26 = vsub.f32 %v1010_v15, %v468_v13  ;;  %v515_v27 = vsub.f32 %v1040_v4, %v469_v20 }
 0x145   :  { %v535_v33 = vmul.f32 1.442695, %v511_v22  ;;  %v1118_v35 = vpop.xlane.xlu0 %461  ;;  %v516_v38 = vsub.f32 %v1042_v10, %v470_v21  ;;  %v518_v9 = vsub.f32 %v1061_v47, %v472_v37 }
 0x146   :  { %v537_v34 = vmul.f32 1.442695, %v512_v19  ;;  %v539_v41 = vmul.f32 1.442695, %v513_v24  ;;  %v541_v7 = vmul.f32 1.442695, %v514_v26  ;;  %v527_v46 = vsub.f32 %v975_v23, %v1118_v35 }
 0x147   :  { %v459_v42 = vpop.xlane.xlu1 %458  ;;  %v543_v15 = vmul.f32 1.442695, %v515_v27  ;;  %v480_v4 = vrot.slane %v1118_v35, 1  ;;  %v481_v10 = vrot.slane %v1118_v35, 2  ;;  %v482_v57 = vrot.slane %v1118_v35, 3 }
 0x148   :  { %821 = vpow2.f32 %v537_v34  ;;  %v473_v8 = vrot.slane %v459_v42, 1  ;;  %v474_v32 = vrot.slane %v459_v42, 2  ;;  %v475_v43 = vrot.slane %v459_v42, 3 }
 0x149   :  { %v476_v45 = vrot.slane %v459_v42, 4  ;;  %823 = vpow2.f32 %v535_v33  ;;  %v519_v51 = vsub.f32 %v945_v55, %v459_v42  ;;  %v528_v55 = vsub.f32 %v972_v18, %v480_v4 }
 0x14a   :  { %v520_v16 = vsub.f32 %v950_v60, %v473_v8  ;;  %825 = vpow2.f32 %v539_v41  ;;  %v521_v40 = vsub.f32 %v994_v44, %v474_v32  ;;  %v522_v50 = vsub.f32 %v1031_v36, %v475_v43 }
 0x14b   :  { %v523_v53 = vsub.f32 %v1057_v39, %v476_v45  ;;  %827 = vpow2.f32 %v541_v7  ;;  %v551_v54 = vmul.f32 1.442695, %v519_v51  ;;  %v483_v59 = vrot.slane %v1118_v35, 4 }
 0x14c   :  { %v553_v30 = vmul.f32 1.442695, %v520_v16  ;;  %829 = vpow2.f32 %v543_v15  ;;  %v555_v23 = vmul.f32 1.442695, %v521_v40  ;;  %v557_v58 = vmul.f32 1.442695, %v522_v50 }
 0x14d   :  { %831 = vpow2.f32 %v551_v54  ;;  %v559_v60 = vmul.f32 1.442695, %v523_v53  ;;  %v517_v44 = vsub.f32 %v1049_v28, %v471_v29  ;;  %v477_v61 = vrot.slane %v459_v42, 5 }
 0x14e   :  { %833 = vpow2.f32 %v553_v30  ;;  %v529_v36 = vsub.f32 %v1007_v1, %v481_v10  ;;  %v530_v39 = vsub.f32 %v1026_v31, %v482_v57  ;;  %v478_v62 = vrot.slane %v459_v42, 6 }
 0x14f   :  { %835 = vpow2.f32 %v555_v23  ;;  %v531_v63 = vsub.f32 %v1044_v14, %v483_v59  ;;  %v567_v17 = vmul.f32 1.442695, %v527_v46  ;;  %v479_v2 = vrot.slane %v459_v42, 7 }
 0x150   :  { %837 = vpow2.f32 %v557_v58  ;;  %v569_v18 = vmul.f32 1.442695, %v528_v55  ;;  %v571_v3 = vmul.f32 1.442695, %v529_v36  ;;  %v484_v28 = vrot.slane %v1118_v35, 5 }
 0x151   :  { %839 = vpow2.f32 %v559_v60  ;;  %v573_v6 = vmul.f32 1.442695, %v530_v39  ;;  %v524_v1 = vsub.f32 %v1066_v48, %v477_v61  ;;  %v485_v31 = vrot.slane %v1118_v35, 6 }
 0x152   :  { %v1138_v5 = vpop.eup %821  ;;  %841 = vpow2.f32 %v567_v17  ;;  %v575_v11 = vmul.f32 1.442695, %v531_v63  ;;  %v486_v12 = vrot.slane %v1118_v35, 7  ;;  %v545_v13 = vmul.f32 1.442695, %v516_v38 }
 0x153   :  { %v1144_v14 = vpop.eup %823  ;;  %843 = vpow2.f32 %v569_v18  ;;  %v525_v20 = vsub.f32 %v1083_v56, %v478_v62  ;;  %v547_v22 = vmul.f32 1.442695, %v517_v44  ;;  %v607_v47 = vrot.slane %v1138_v5, 7 }
 0x154   :  { %v1148_v21 = vpop.eup %825  ;;  %845 = vpow2.f32 %v571_v3  ;;  %v526_v48 = vsub.f32 %v1095_v0, %v479_v2  ;;  %v532_v24 = vsub.f32 %v1047_v25, %v484_v28  ;;  %v549_v26 = vmul.f32 1.442695, %v518_v9 }
 0x155   :  { %v1152_v19 = vpop.eup %827  ;;  %847 = vpow2.f32 %v573_v6  ;;  %v561_v29 = vmul.f32 1.442695, %v524_v1  ;;  %v533_v56 = vsub.f32 %v1068_v49, %v485_v31  ;;  %v609_v34 = vrot.slane %v1148_v21, 6 }
 0x156   :  { %v1155_v27 = vpop.eup %829  ;;  %849 = vpow2.f32 %v575_v11  ;;  %v563_v35 = vmul.f32 1.442695, %v525_v20  ;;  %v534_v0 = vsub.f32 %v1076_v52, %v486_v12  ;;  %v608_v25 = vsel %vm423_vm1, %v607_v47, %v1144_v14 }
 0x157   :  { %v1158_v33 = vpop.eup %831  ;;  %851 = vpow2.f32 %v545_v13  ;;  %v565_v38 = vmul.f32 1.442695, %v526_v48  ;;  %v577_v7 = vmul.f32 1.442695, %v532_v24  ;;  %v579_v32 = vmul.f32 1.442695, %v533_v56 }
 0x158   :  { %v1162_v37 = vpop.eup %833  ;;  %853 = vpow2.f32 %v547_v22  ;;  %v610_v43 = vsel %vm425_vm2, %v609_v34, %v608_v25  ;;  %v581_v45 = vmul.f32 1.442695, %v534_v0  ;;  %v611_v46 = vrot.slane %v1152_v19, 5 }
 0x159   :  { %v1166_v41 = vpop.eup %835  ;;  %855 = vpow2.f32 %v549_v26  ;;  %v621_v49 = vrot.slane %v1162_v37, 7  ;;  %v613_v54 = vrot.slane %v1155_v27, 4 }
 0x15a   :  { %v1169_v42 = vpop.eup %837  ;;  %857 = vpow2.f32 %v561_v29  ;;  %v623_v8 = vrot.slane %v1166_v41, 6  ;;  %v612_v10 = vsel %vm427_vm3, %v611_v46, %v610_v43 }
 0x15b   :  { %v1172_v52 = vpop.eup %839  ;;  %859 = vpow2.f32 %v563_v35  ;;  %v622_v15 = vsel %vm423_vm1, %v621_v49, %v1158_v33  ;;  %v625_v30 = vrot.slane %v1169_v42, 5  ;;  %v614_v60 = vsel %vm429_vm4, %v613_v54, %v612_v10 }
 0x15c   :  { %v1177_v4 = vpop.eup %841  ;;  %861 = vpow2.f32 %v565_v38  ;;  %v624_v40 = vsel %vm425_vm2, %v623_v8, %v622_v15  ;;  %v627_v39 = vrot.slane %v1172_v52, 4 }
 0x15d   :  { %v1180_v51 = vpop.eup %843  ;;  %863 = vpow2.f32 %v577_v7  ;;  %v626_v59 = vsel %vm427_vm3, %v625_v30, %v624_v40 }
 0x15e   :  { %v1182_v16 = vpop.eup %845  ;;  %865 = vpow2.f32 %v579_v32  ;;  %v635_v50 = vrot.slane %v1180_v51, 7  ;;  %v628_v28 = vsel %vm429_vm4, %v627_v39, %v626_v59 }
 0x15f   :  { %v1187_v53 = vpop.eup %847  ;;  %867 = vpow2.f32 %v581_v45  ;;  %v637_v57 = vrot.slane %v1182_v16, 6 }
 0x160   :  { %v1192_v23 = vpop.eup %849  ;;  %v636_v58 = vsel %vm423_vm1, %v635_v50, %v1177_v4  ;;  %v639_v62 = vrot.slane %v1187_v53, 5 }
 0x161   :  { %v1196_v55 = vpop.eup %851  ;;  %v638_v44 = vsel %vm425_vm2, %v637_v57, %v636_v58  ;;  %v641_v11 = vrot.slane %v1192_v23, 4 }
 0x162   :  { %v1201_v61 = vpop.eup %853  ;;  %v615_v36 = vrot.slane %v1196_v55, 3  ;;  %v640_v6 = vsel %vm427_vm3, %v639_v62, %v638_v44 }
 0x163   :  { %v856_v63 = vpop.eup %855  ;;  %v617_v17 = vrot.slane %v1201_v61, 2  ;;  %v642_v26 = vsel %vm429_vm4, %v641_v11, %v640_v6 }
 0x164   :  { %v1207_v2 = vpop.eup %857  ;;  %v616_v18 = vsel %vm431_vm5, %v615_v36, %v614_v60  ;;  %v619_v3 = vrot.slane %v856_v63, 1 }
 0x165   :  { %v1212_v9 = vpop.eup %859  ;;  %v618_v1 = vsel %vm433_vm6, %v617_v17, %v616_v18  ;;  %v629_v31 = vrot.slane %v1207_v2, 3 }
 0x166   :  { %v1217_v12 = vpop.eup %861  ;;  %v620_v13 = vsel %vm435_vm7, %v619_v3, %v618_v1  ;;  %v631_v20 = vrot.slane %v1212_v9, 2 }
 0x167   :  { %v1221_v22 = vpop.eup %863  ;;  %v652_v47 = vsel %vm230_vm0, %v620_v13, 0.0  ;;  %v630_v48 = vsel %vm431_vm5, %v629_v31, %v628_v28  ;;  %v633_v24 = vrot.slane %v1217_v12, 1 }
 0x168   :  { %v1227_v29 = vpop.eup %865  ;;  %653 = vadd.xlane.f32.xlu0 %v652_v47  ;;  %v632_v56 = vsel %vm433_vm6, %v631_v20, %v630_v48  ;;  %v643_v34 = vrot.slane %v1221_v22, 3 }
 0x169   :  { %v1231_v35 = vpop.eup %867  ;;  %v634_v0 = vsel %vm435_vm7, %v633_v24, %v632_v56  ;;  %v645_v25 = vrot.slane %v1227_v29, 2 }
 0x16a   :  { %v655_v38 = vsel %vm230_vm0, %v634_v0, 0.0  ;;  %v644_v49 = vsel %vm431_vm5, %v643_v34, %v642_v26  ;;  %v647_v7 = vrot.slane %v1231_v35, 1 }
 0x16b   :  { %656 = vadd.xlane.f32.xlu1 %v655_v38  ;;  %v646_v8 = vsel %vm433_vm6, %v645_v25, %v644_v49 }
 0x16c   :  { %v648_v32 = vsel %vm435_vm7, %v647_v7, %v646_v8 }
 0x16d   :  { %v658_v43 = vsel %vm230_vm0, %v648_v32, 0.0 }
 0x16e   :  { %659 = vadd.xlane.f32.xlu0 %v658_v43 }
 0x1f5   :  { %v654_v15 = vpop.xlane.xlu0 %653 }
 0x1f6   :  { %869 = vrcp.f32 %v654_v15 }
 0x1f8   :  { %v657_v45 = vpop.xlane.xlu1 %656 }
 0x1f9   :  { %871 = vrcp.f32 %v657_v45 }
 0x1fb   :  { %v660_v54 = vpop.xlane.xlu0 %659 }
 0x1fc   :  { %873 = vrcp.f32 %v660_v54 }
 0x200   :  { %v870_v46 = vpop.eup %869 }
 0x201   :  { %v664_v10 = vmul.f32 %v870_v46, %v654_v15 }
 0x203   :  { %v872_v40 = vpop.eup %871  ;;  %v667_v50 = vsub.f32 2.0, %v664_v10 }
 0x204   :  { %v665_v30 = vmul.f32 %v872_v40, %v657_v45 }
 0x205   :  { %v670_v57 = vmul.f32 %v870_v46, %v667_v50 }
 0x206   :  { %v668_v58 = vsub.f32 2.0, %v665_v30  ;;  %v874_v7 = vpop.eup %873 }
 0x207   :  { %v676_v60 = vrot.slane %v670_v57, 1  ;;  %v677_v59 = vrot.slane %v670_v57, 2  ;;  %v678_v44 = vrot.slane %v670_v57, 3  ;;  %v679_v36 = vrot.slane %v670_v57, 4 }
 0x208   :  { %v680_v39 = vrot.slane %v670_v57, 5  ;;  %v681_v62 = vrot.slane %v670_v57, 6  ;;  %v682_v17 = vrot.slane %v670_v57, 7  ;;  %v671_v11 = vmul.f32 %v872_v40, %v668_v58 }
 0x209   :  { %v722_v18 = vmul.f32 %v1138_v5, %v676_v60  ;;  %v723_v3 = vmul.f32 %v1148_v21, %v677_v59  ;;  %v724_v28 = vmul.f32 %v1152_v19, %v678_v44  ;;  %v725_v6 = vmul.f32 %v1155_v27, %v679_v36 }
 0x20a   :  { %v726_v1 = vmul.f32 %v1196_v55, %v680_v39  ;;  %v727_v31 = vmul.f32 %v1201_v61, %v681_v62  ;;  %v721_v13 = vmul.f32 %v1144_v14, %v670_v57  ;;  %v728_v20 = vmul.f32 %v856_v63, %v682_v17 }
 0x20b   :  { %v769_v47 = vrot.slane %v722_v18, 7  ;;  %v771_v48 = vrot.slane %v723_v3, 6  ;;  %v773_v24 = vrot.slane %v724_v28, 5  ;;  %v775_v26 = vrot.slane %v725_v6, 4 }
 0x20c   :  { %v777_v56 = vrot.slane %v726_v1, 3  ;;  %v683_v5 = vrot.slane %v671_v11, 1  ;;  %v684_v34 = vrot.slane %v671_v11, 2  ;;  %v685_v19 = vrot.slane %v671_v11, 3 }
 0x20d   :  { %v770_v21 = vsel %vm423_vm1, %v769_v47, %v721_v13  ;;  %v686_v0 = vrot.slane %v671_v11, 4  ;;  %v779_v55 = vrot.slane %v727_v31, 2  ;;  %v687_v25 = vrot.slane %v671_v11, 5 }
 0x20e   :  { %v772_v27 = vsel %vm425_vm2, %v771_v48, %v770_v21  ;;  %v688_v61 = vrot.slane %v671_v11, 6  ;;  %v689_v14 = vrot.slane %v671_v11, 7  ;;  %v730_v63 = vmul.f32 %v1162_v37, %v683_v5 }
 0x20f   :  { %v774_v38 = vsel %vm427_vm3, %v773_v24, %v772_v27  ;;  %v731_v49 = vmul.f32 %v1166_v41, %v684_v34  ;;  %v781_v32 = vrot.slane %v728_v20, 1  ;;  %v732_v43 = vmul.f32 %v1169_v42, %v685_v19 }
 0x210   :  { %v776_v8 = vsel %vm429_vm4, %v775_v26, %v774_v38  ;;  %v733_v15 = vmul.f32 %v1172_v52, %v686_v0  ;;  %v729_v46 = vmul.f32 %v1158_v33, %v671_v11  ;;  %v734_v10 = vmul.f32 %v1207_v2, %v687_v25 }
 0x211   :  { %v778_v45 = vsel %vm431_vm5, %v777_v56, %v776_v8  ;;  %v783_v40 = vrot.slane %v730_v63, 7  ;;  %v735_v37 = vmul.f32 %v1212_v9, %v688_v61  ;;  %v785_v41 = vrot.slane %v731_v49, 6 }
 0x212   :  { %v780_v50 = vsel %vm433_vm6, %v779_v55, %v778_v45  ;;  %v736_v57 = vmul.f32 %v1217_v12, %v689_v14  ;;  %v787_v58 = vrot.slane %v732_v43, 5  ;;  %v789_v52 = vrot.slane %v733_v15, 4 }
 0x213   :  { %v782_v30 = vsel %vm435_vm7, %v781_v32, %v780_v50  ;;  %v784_v42 = vsel %vm423_vm1, %v783_v40, %v729_v46  ;;  %v666_v2 = vmul.f32 %v874_v7, %v660_v54  ;;  %v791_v9 = vrot.slane %v734_v10, 3 }
 0x214   :  { %814 = vst.msk [vmem:[%s1299_s2] sm:$0xff] %vm230_vm0, %v782_v30  ;;  %v786_v33 = vsel %vm425_vm2, %v785_v41, %v784_v42  ;;  %v793_v44 = vrot.slane %v735_v37, 2  ;;  %v795_v39 = vrot.slane %v736_v57, 1 }
 0x215   :  { %v788_v60 = vsel %vm427_vm3, %v787_v58, %v786_v33  ;;  %v669_v36 = vsub.f32 2.0, %v666_v2 }
 0x216   :  { %v790_v59 = vsel %vm429_vm4, %v789_v52, %v788_v60 }
 0x217   :  { %v792_v12 = vsel %vm431_vm5, %v791_v9, %v790_v59  ;;  %v672_v17 = vmul.f32 %v874_v7, %v669_v36 }
 0x218   :  { %v794_v62 = vsel %vm433_vm6, %v793_v44, %v792_v12 }
 0x219   :  { %v796_v18 = vsel %vm435_vm7, %v795_v39, %v794_v62  ;;  %v690_v54 = vrot.slane %v672_v17, 1  ;;  %v691_v3 = vrot.slane %v672_v17, 2  ;;  %v692_v28 = vrot.slane %v672_v17, 3 }
 0x21a   :  { %815 = vst.msk [vmem:[%s1299_s2 + $0x8] sm:$0xff] %vm230_vm0, %v796_v18  ;;  %v693_v6 = vrot.slane %v672_v17, 4  ;;  %v694_v1 = vrot.slane %v672_v17, 5  ;;  %v695_v31 = vrot.slane %v672_v17, 6  ;;  %v696_v11 = vrot.slane %v672_v17, 7 }
 0x21b   :  { %v738_v13 = vmul.f32 %v1180_v51, %v690_v54  ;;  %v739_v20 = vmul.f32 %v1182_v16, %v691_v3  ;;  %v740_v47 = vmul.f32 %v1187_v53, %v692_v28  ;;  %v737_v24 = vmul.f32 %v1177_v4, %v672_v17 }
 0x21c   :  { %v741_v48 = vmul.f32 %v1192_v23, %v693_v6  ;;  %v742_v26 = vmul.f32 %v1221_v22, %v694_v1  ;;  %v743_v21 = vmul.f32 %v1227_v29, %v695_v31  ;;  %v744_v34 = vmul.f32 %v1231_v35, %v696_v11 }
 0x21d   :  { %v797_v56 = vrot.slane %v738_v13, 7  ;;  %v799_v5 = vrot.slane %v739_v20, 6  ;;  %v801_v0 = vrot.slane %v740_v47, 5 }
 0x21e   :  { %v803_v16 = vrot.slane %v741_v48, 4  ;;  %v805_v27 = vrot.slane %v742_v26, 3  ;;  %v807_v4 = vrot.slane %v743_v21, 2  ;;  %v809_v55 = vrot.slane %v744_v34, 1 }
 0x21f   :  { %v798_v19 = vsel %vm423_vm1, %v797_v56, %v737_v24 }
 0x220   :  { %v800_v51 = vsel %vm425_vm2, %v799_v5, %v798_v19 }
 0x221   :  { %v802_v53 = vsel %vm427_vm3, %v801_v0, %v800_v51 }
 0x222   :  { %v804_v23 = vsel %vm429_vm4, %v803_v16, %v802_v53 }
 0x223   :  { %v806_v22 = vsel %vm431_vm5, %v805_v27, %v804_v23 }
 0x224   :  { %v808_v25 = vsel %vm433_vm6, %v807_v4, %v806_v22 }
 0x225   :  { %v810_v29 = vsel %vm435_vm7, %v809_v55, %v808_v25 }
 0x226   :  { %816 = vst.msk [vmem:[%s1299_s2 + $0x10] sm:$0xff] %vm230_vm0, %v810_v29 }

</bundles_post_ra>
